<compile_context>
chip_gen: v7x
topology: tpu7x:2x2x1
jax: 0.10.0
libtpu: 0.0.40
codegen_flags: <defaults>
</compile_context>

<pallas_src>
import jax
import jax.numpy as jnp
from jax import lax
from jax.experimental import pallas as pl
from jax.experimental.pallas import tpu as pltpu


def _gelu_exact(x):
    # nn.GELU() default = exact erf-based GELU (kept exact to match PyTorch).
    return 0.5 * x * (1.0 + lax.erf(x * (2.0 ** -0.5)))


def _round_up(n, m):
    return ((n + m - 1) // m) * m


def _make_kernel(hc, n_chunks, cdt):
    """Kernel for one (TM, D) row tile.  The hidden dim is processed in
    `n_chunks` static chunks of width `hc`, bounding live VMEM/vreg pressure
    to O(TM * hc) (the full (TM, H) GELU intermediate is never materialized
    when n_chunks > 1)."""

    def kernel(x_ref, u1s_ref, v1t_ref, b1_ref, u2s_ref, v2t_ref, b2_ref, o_ref):
        x = x_ref[...]
        # c_fc, first factor: (TM, D) @ (D, Rp1) -> (TM, Rp1), f32 accumulation.
        t1 = jnp.dot(x.astype(cdt), u1s_ref[...],
                     preferred_element_type=jnp.float32)
        t1c = t1.astype(cdt)

        # Hidden dim chunk loop (static, unrolled — small trip count):
        #   h_c = t1 @ V1t[:, c];  h_c = GELU(h_c + b1[c]);  t2 += h_c @ U2S[c, :]
        t2 = None
        for c in range(n_chunks):
            lo = c * hc
            h = jnp.dot(t1c, v1t_ref[:, lo:lo + hc],
                        preferred_element_type=jnp.float32)
            h = _gelu_exact(h + b1_ref[:, lo:lo + hc])      # bias + GELU in f32
            part = jnp.dot(h.astype(cdt), u2s_ref[lo:lo + hc, :],
                           preferred_element_type=jnp.float32)
            t2 = part if t2 is None else t2 + part

        # c_proj, second factor: (TM, Rp2) @ (Rp2, D) -> (TM, D)
        out = jnp.dot(t2.astype(cdt), v2t_ref[...],
                      preferred_element_type=jnp.float32)
        out = out + b2_ref[...]
        # Lane-dense store for production n_embd >= 128; masked (perf-only) at
        # tiny D.
        o_ref[...] = out.astype(o_ref.dtype)

    return kernel


def _resident_spec(shape):
    """Full-array block with a constant index map -> stays resident in VMEM.
    Single-buffered: a block that never changes gains nothing from the default
    double buffering, so halve its VMEM footprint (biggest win on v7x)."""
    index_map = lambda i: (0,) * len(shape)
    try:
        return pl.BlockSpec(shape, index_map, pipeline_mode=pl.Buffered(1))
    except (TypeError, AttributeError):
        return pl.BlockSpec(shape, index_map)   # older JAX: fall back to default


def _default_mxu_dtype():
    # v5e's MXU is natively bf16 (f32 matmul is emulated, ~3x slower) -> bf16
    # operands there; keep f32 operands on v6e/v7x unless the caller opts in.
    try:
        kind = jax.devices()[0].device_kind.lower()
    except Exception:
        return jnp.float32
    return jnp.bfloat16 if "v5" in kind else jnp.float32


def hybrid_super_layer(x, params, *, tile_m=1024, hidden_chunk=None,
                       mxu_dtype=None, vmem_limit_bytes=None):
    """x: (batch, seq, n_embd).
    params = (c_fc_U, c_fc_S, c_fc_V, c_fc_bias,
              c_proj_U, c_proj_S, c_proj_V, c_proj_bias).

    tile_m:       row-tile size (forced to a multiple of 8). 1024 is sized for
                  v5e/v6e's 128 MiB VMEM; on v7x at production D either shrink
                  it (e.g. 256) or set hidden_chunk.
    hidden_chunk: optional chunk width (multiple of 128, dividing H) for the
                  GELU intermediate — bounds VMEM so v7x keeps large row tiles.
    mxu_dtype:    MXU operand dtype; None -> bf16 on v5e, f32 elsewhere.
    """
    u1, s1, v1, b1, u2, s2, v2, b2 = params
    B, S, D = x.shape
    H = v1.shape[0]
    R1 = u1.shape[1]
    R2 = u2.shape[1]
    M = B * S
    x2 = x.reshape(M, D)

    if mxu_dtype is None:
        mxu_dtype = _default_mxu_dtype()

    # ---- One-time weight prep in the wrapper (outside the kernel) ----------
    # Fold S into U, pre-transpose V, zero-pad the rank axes to a multiple of
    # 128 so every factor and the (TM, R) intermediates are lane-dense.
    rp1 = _round_up(R1, 128)
    rp2 = _round_up(R2, 128)
    u1s = jnp.pad(u1 * s1[None, :], ((0, 0), (0, rp1 - R1))).astype(mxu_dtype)  # (D, Rp1)
    v1t = jnp.pad(v1.T, ((0, rp1 - R1), (0, 0))).astype(mxu_dtype)              # (Rp1, H)
    u2s = jnp.pad(u2 * s2[None, :], ((0, 0), (0, rp2 - R2))).astype(mxu_dtype)  # (H, Rp2)
    v2t = jnp.pad(v2.T, ((0, rp2 - R2), (0, 0))).astype(mxu_dtype)              # (Rp2, D)
    b1r = b1.reshape(1, H).astype(jnp.float32)
    b2r = b2.reshape(1, D).astype(jnp.float32)

    # ---- Row tiling ----------------------------------------------------------
    tile_m = max(8, (int(tile_m) // 8) * 8)      # enforce the (8,128) sublane rule
    tm = M if M <= tile_m else tile_m
    grid = (pl.cdiv(M, tm),)

    # ---- Hidden-dim chunking -------------------------------------------------
    if (hidden_chunk is None or hidden_chunk >= H
            or H % hidden_chunk != 0 or hidden_chunk % 128 != 0):
        hc, n_chunks = H, 1
    else:
        hc, n_chunks = int(hidden_chunk), H // int(hidden_chunk)

    # ---- Explicit VMEM budget + cost estimate --------------------------------
    w_it = jnp.dtype(mxu_dtype).itemsize
    x_it = jnp.dtype(x.dtype).itemsize
    resident_bytes = ((u1s.size + v1t.size + u2s.size + v2t.size) * w_it
                      + (b1r.size + b2r.size) * 4)          # single-buffered
    stream_bytes = 2 * 2 * tm * D * x_it                    # x & out, double-buffered
    work_bytes = (tm * (rp1 + rp2) * (4 + w_it)             # t1/t2 (+ cast copies)
                  + tm * hc * (4 + w_it)                    # one hidden chunk
                  + tm * D * 4)                             # f32 out before cast
    if vmem_limit_bytes is None:
        est = resident_bytes + stream_bytes + work_bytes
        # Headroom, but stay under v7x's 64 MiB per-TC physical VMEM.
        vmem_limit_bytes = int(min(max(2 * est, 32 << 20), 48 << 20))

    cost = pl.CostEstimate(
        flops=int(2 * M * (D * rp1 + rp1 * H + H * rp2 + rp2 * D)),
        transcendentals=int(M * H),                          # erf per hidden element
        bytes_accessed=int(M * D * x_it * 2 + resident_bytes),
    )

    kernel = _make_kernel(hc, n_chunks, mxu_dtype)

    out2 = pl.pallas_call(
        kernel,
        out_shape=jax.ShapeDtypeStruct((M, D), x.dtype),
        grid_spec=pltpu.PrefetchScalarGridSpec(
            num_scalar_prefetch=0,
            grid=grid,
            in_specs=[
                pl.BlockSpec((tm, D), lambda i: (i, 0)),     # streaming x row tile
                _resident_spec(u1s.shape), _resident_spec(v1t.shape),
                _resident_spec(b1r.shape),
                _resident_spec(u2s.shape), _resident_spec(v2t.shape),
                _resident_spec(b2r.shape),
            ],
            out_specs=pl.BlockSpec((tm, D), lambda i: (i, 0)),
        ),
        compiler_params=pltpu.CompilerParams(
            dimension_semantics=("parallel",),   # row tiles split across v7x's 2 TCs
            vmem_limit_bytes=vmem_limit_bytes,
        ),
        cost_estimate=cost,
    )(x2, u1s, v1t, b1r, u2s, v2t, b2r)
    return out2.reshape(B, S, D)


if __name__ == "__main__":
    # Small shapes consistent with the module: n_embd=64, hidden=4*n_embd=256,
    # SVD ranks r1=r2=16, batch=2, seq=8.
    B, S, D, H, R1, R2 = 2, 8, 64, 256, 16, 16

    key = jax.random.PRNGKey(0)
    ks = jax.random.split(key, 9)
    x = jax.random.normal(ks[0], (B, S, D), jnp.float32)

    # Synthetic parameters with the shapes produced by torch.svd factorization:
    # c_fc:   U (D, R1), S (R1,), V (H, R1), bias (H,)
    # c_proj: U (H, R2), S (R2,), V (D, R2), bias (D,)
    u1 = jax.random.normal(ks[1], (D, R1), jnp.float32) * 0.1
    s1 = jax.random.uniform(ks[2], (R1,), jnp.float32, minval=0.5, maxval=1.5)
    v1 = jax.random.normal(ks[3], (H, R1), jnp.float32) * 0.1
    b1 = jax.random.normal(ks[4], (H,), jnp.float32) * 0.01
    u2 = jax.random.normal(ks[5], (H, R2), jnp.float32) * 0.1
    s2 = jax.random.uniform(ks[6], (R2,), jnp.float32, minval=0.5, maxval=1.5)
    v2 = jax.random.normal(ks[7], (D, R2), jnp.float32) * 0.1
    b2 = jax.random.normal(ks[8], (D,), jnp.float32) * 0.01
    params = (u1, s1, v1, b1, u2, s2, v2, b2)

    # Pure-JAX reference (same op order as the PyTorch forward).
    w1 = (u1 * s1[None, :]) @ v1.T
    w2 = (u2 * s2[None, :]) @ v2.T
    h_ref = jax.nn.gelu(x.reshape(-1, D) @ w1 + b1[None, :], approximate=False)
    ref = (h_ref @ w2 + b2[None, :]).reshape(B, S, D)

    # 1) f32 MXU, multi-tile grid (tile_m=8 -> grid=(2,)): exercises row tiling
    #    and resident (single-buffered) weight specs.
    out = jax.block_until_ready(
        hybrid_super_layer(x, params, tile_m=8, mxu_dtype=jnp.float32))
    assert out.shape == (B, S, D)
    assert jnp.allclose(out, ref, atol=1e-4, rtol=1e-4)

    # 2) f32 MXU with hidden-dim chunking (H=256 -> 2 chunks of 128): the v7x
    #    VMEM-bounding path.
    out_chunk = jax.block_until_ready(
        hybrid_super_layer(x, params, tile_m=8, hidden_chunk=128,
                           mxu_dtype=jnp.float32))
    assert jnp.allclose(out_chunk, ref, atol=1e-4, rtol=1e-4)

    # 3) Default tile plan (single tile at these tiny shapes), f32 MXU operands.
    out_default = jax.block_until_ready(
        hybrid_super_layer(x, params, mxu_dtype=jnp.float32))
    assert jnp.allclose(out_default, ref, atol=1e-4, rtol=1e-4)

    # 4) bf16 MXU operands (v5e default / v6e-v7x perf config): f32 accumulation
    #    and f32 elementwise, verified with a looser tolerance.
    out_bf16 = jax.block_until_ready(
        hybrid_super_layer(x, params, tile_m=8, hidden_chunk=128,
                           mxu_dtype=jnp.bfloat16))
    assert float(jnp.max(jnp.abs(out_bf16 - ref))) < 5e-2

    # 5) bf16 activations in / bf16 out (halves the x/out HBM stream when the
    #    surrounding model already runs bf16).
    out_b16io = jax.block_until_ready(
        hybrid_super_layer(x.astype(jnp.bfloat16), params,
                           mxu_dtype=jnp.bfloat16))
    assert out_b16io.dtype == jnp.bfloat16
    assert float(jnp.max(jnp.abs(out_b16io.astype(jnp.float32) - ref))) < 5e-2

    print("KERNEL_OK")
</pallas_src>

<mosaic_0001>
module attributes {stable_mosaic.version = 11 : i64} {
  func.func @kernel(%arg0: i32, %arg1: memref<8x64xf32, #tpu.memory_space<vmem>>, %arg2: memref<64x128xf32, #tpu.memory_space<vmem>>, %arg3: memref<128x256xf32, #tpu.memory_space<vmem>>, %arg4: memref<1x256xf32, #tpu.memory_space<vmem>>, %arg5: memref<256x128xf32, #tpu.memory_space<vmem>>, %arg6: memref<128x64xf32, #tpu.memory_space<vmem>>, %arg7: memref<1x64xf32, #tpu.memory_space<vmem>>, %arg8: memref<8x64xf32, #tpu.memory_space<vmem>>) attributes {dimension_semantics = [#tpu.dimension_semantics<parallel>], iteration_bounds = array<i64: 2>, scalar_prefetch = 0 : i64, scratch_operands = 0 : i64, tpu.core_type = #tpu.core_type<tc>, window_params = [{transform_indices = @transform_0, window_bounds = array<i64: 8, 64>}, {pipeline_mode = #tpu.pipeline_mode<synchronous>, transform_indices = @transform_1, window_bounds = array<i64: 64, 128>}, {pipeline_mode = #tpu.pipeline_mode<synchronous>, transform_indices = @transform_2, window_bounds = array<i64: 128, 256>}, {pipeline_mode = #tpu.pipeline_mode<synchronous>, transform_indices = @transform_3, window_bounds = array<i64: 1, 256>}, {pipeline_mode = #tpu.pipeline_mode<synchronous>, transform_indices = @transform_4, window_bounds = array<i64: 256, 128>}, {pipeline_mode = #tpu.pipeline_mode<synchronous>, transform_indices = @transform_5, window_bounds = array<i64: 128, 64>}, {pipeline_mode = #tpu.pipeline_mode<synchronous>, transform_indices = @transform_6, window_bounds = array<i64: 1, 64>}, {transform_indices = @transform_7, window_bounds = array<i64: 8, 64>}]} {
    %c0 = arith.constant 0 : index
    %c0_0 = arith.constant 0 : index
    %0 = vector.load %arg1[%c0, %c0_0] : memref<8x64xf32, #tpu.memory_space<vmem>>, vector<8x64xf32>
    %c0_1 = arith.constant 0 : index
    %c0_2 = arith.constant 0 : index
    %1 = vector.load %arg2[%c0_1, %c0_2] : memref<64x128xf32, #tpu.memory_space<vmem>>, vector<64x128xf32>
    %cst = arith.constant dense<0.000000e+00> : vector<8x128xf32>
    %2 = tpu.matmul %0, %1, %cst {dimension_numbers = #tpu.dot_dimension_numbers<[1], [0], [0], [1], [0, 0, 1, 1], [], []>} : vector<8x64xf32>, vector<64x128xf32>, vector<8x128xf32> -> vector<8x128xf32>
    %c0_3 = arith.constant 0 : index
    %c0_4 = arith.constant 0 : index
    %3 = vector.load %arg3[%c0_3, %c0_4] : memref<128x256xf32, #tpu.memory_space<vmem>>, vector<128x256xf32>
    %cst_5 = arith.constant dense<0.000000e+00> : vector<8x256xf32>
    %4 = tpu.matmul %2, %3, %cst_5 {dimension_numbers = #tpu.dot_dimension_numbers<[1], [0], [0], [1], [0, 0, 1, 1], [], []>} : vector<8x128xf32>, vector<128x256xf32>, vector<8x256xf32> -> vector<8x256xf32>
    %c0_6 = arith.constant 0 : index
    %c0_7 = arith.constant 0 : index
    %5 = vector.load %arg4[%c0_6, %c0_7] : memref<1x256xf32, #tpu.memory_space<vmem>>, vector<1x256xf32>
    %6 = vector.broadcast %5 : vector<1x256xf32> to vector<8x256xf32>
    %7 = arith.addf %4, %6 : vector<8x256xf32>
    %cst_8 = arith.constant 5.000000e-01 : f32
    %8 = vector.broadcast %cst_8 : f32 to vector<8x256xf32>
    %9 = arith.mulf %8, %7 : vector<8x256xf32>
    %cst_9 = arith.constant 0.707106769 : f32
    %10 = vector.broadcast %cst_9 : f32 to vector<8x256xf32>
    %11 = arith.mulf %7, %10 : vector<8x256xf32>
    %12 = math.erf %11 : vector<8x256xf32>
    %cst_10 = arith.constant 1.000000e+00 : f32
    %13 = vector.broadcast %cst_10 : f32 to vector<8x256xf32>
    %14 = arith.addf %13, %12 : vector<8x256xf32>
    %15 = arith.mulf %9, %14 : vector<8x256xf32>
    %c0_11 = arith.constant 0 : index
    %c0_12 = arith.constant 0 : index
    %16 = vector.load %arg5[%c0_11, %c0_12] : memref<256x128xf32, #tpu.memory_space<vmem>>, vector<256x128xf32>
    %cst_13 = arith.constant dense<0.000000e+00> : vector<8x128xf32>
    %17 = tpu.matmul %15, %16, %cst_13 {dimension_numbers = #tpu.dot_dimension_numbers<[1], [0], [0], [1], [0, 0, 1, 1], [], []>} : vector<8x256xf32>, vector<256x128xf32>, vector<8x128xf32> -> vector<8x128xf32>
    %c0_14 = arith.constant 0 : index
    %c0_15 = arith.constant 0 : index
    %18 = vector.load %arg6[%c0_14, %c0_15] : memref<128x64xf32, #tpu.memory_space<vmem>>, vector<128x64xf32>
    %cst_16 = arith.constant dense<0.000000e+00> : vector<8x64xf32>
    %19 = tpu.matmul %17, %18, %cst_16 {dimension_numbers = #tpu.dot_dimension_numbers<[1], [0], [0], [1], [0, 0, 1, 1], [], []>} : vector<8x128xf32>, vector<128x64xf32>, vector<8x64xf32> -> vector<8x64xf32>
    %c0_17 = arith.constant 0 : index
    %c0_18 = arith.constant 0 : index
    %20 = vector.load %arg7[%c0_17, %c0_18] : memref<1x64xf32, #tpu.memory_space<vmem>>, vector<1x64xf32>
    %21 = vector.broadcast %20 : vector<1x64xf32> to vector<8x64xf32>
    %22 = arith.addf %19, %21 : vector<8x64xf32>
    %c0_19 = arith.constant 0 : index
    %c0_20 = arith.constant 0 : index
    %23 = vector.load %arg8[%c0_19, %c0_20] : memref<8x64xf32, #tpu.memory_space<vmem>>, vector<8x64xf32>
    tpu.vector_store %arg8[%c0_19, %c0_20], %22 {strides = array<i32>} : memref<8x64xf32, #tpu.memory_space<vmem>>, vector<8x64xf32>,
    return
  }
  func.func @transform_0(%arg0: i32) -> (i32, i32) {
    %c0_i32 = arith.constant 0 : i32
    %c0_i32_0 = arith.constant 0 : i32
    return %arg0, %c0_i32 : i32, i32
  }
  func.func @transform_1(%arg0: i32) -> (i32, i32) {
    %c0_i32 = arith.constant 0 : i32
    %c0_i32_0 = arith.constant 0 : i32
    %c0_i32_1 = arith.constant 0 : i32
    return %c0_i32, %c0_i32_0 : i32, i32
  }
  func.func @transform_2(%arg0: i32) -> (i32, i32) {
    %c0_i32 = arith.constant 0 : i32
    %c0_i32_0 = arith.constant 0 : i32
    %c0_i32_1 = arith.constant 0 : i32
    return %c0_i32, %c0_i32_0 : i32, i32
  }
  func.func @transform_3(%arg0: i32) -> (i32, i32) {
    %c0_i32 = arith.constant 0 : i32
    %c0_i32_0 = arith.constant 0 : i32
    %c0_i32_1 = arith.constant 0 : i32
    return %c0_i32, %c0_i32_0 : i32, i32
  }
  func.func @transform_4(%arg0: i32) -> (i32, i32) {
    %c0_i32 = arith.constant 0 : i32
    %c0_i32_0 = arith.constant 0 : i32
    %c0_i32_1 = arith.constant 0 : i32
    return %c0_i32, %c0_i32_0 : i32, i32
  }
  func.func @transform_5(%arg0: i32) -> (i32, i32) {
    %c0_i32 = arith.constant 0 : i32
    %c0_i32_0 = arith.constant 0 : i32
    %c0_i32_1 = arith.constant 0 : i32
    return %c0_i32, %c0_i32_0 : i32, i32
  }
  func.func @transform_6(%arg0: i32) -> (i32, i32) {
    %c0_i32 = arith.constant 0 : i32
    %c0_i32_0 = arith.constant 0 : i32
    %c0_i32_1 = arith.constant 0 : i32
    return %c0_i32, %c0_i32_0 : i32, i32
  }
  func.func @transform_7(%arg0: i32) -> (i32, i32) {
    %c0_i32 = arith.constant 0 : i32
    %c0_i32_0 = arith.constant 0 : i32
    return %arg0, %c0_i32 : i32, i32
  }
}

</mosaic_0001>

<bundles_post_ra>
// kernel: tpu_custom_call.1
= control target key start
LH: loop header
LB: loop body
LE: loop exit
PB: predicated region body
PF: predicated region fallthrough
CT: control target
= control target key end

     0   :  { %12 = vsyncpa [#allocation3], 0  ;;  %s1552_s0 = inlined_call_operand.vmem [shape: f32[16,64], index: 0, kind: input, shape index: {}]   ;;  %s1553_s1 = inlined_call_operand.vmem [shape: f32[64,128], index: 1, kind: input, shape index: {}]   ;;  %s1554_s2 = inlined_call_operand.hbm [shape: f32[128,256], index: 2, kind: input, shape index: {}]   ;;  %s1555_s3 = inlined_call_operand.vmem [shape: f32[1,256], index: 3, kind: input, shape index: {}]   ;;  %s1556_s4 = inlined_call_operand.hbm [shape: f32[256,128], index: 4, kind: input, shape index: {}]   ;;  %s1557_s5 = inlined_call_operand.vmem [shape: f32[128,64], index: 5, kind: input, shape index: {}]   ;;  %s1558_s6 = inlined_call_operand.vmem [shape: f32[1,64], index: 6, kind: input, shape index: {}]   ;;  %s1559_s7 = inlined_call_operand.hbm [shape: f32[16,64], index: 7, kind: output, shape index: {}]  }
   0x1   :  { %13 = vsyncpa [#allocation6], 0 }
   0x2   :  { %14 = vsyncpa [#allocation4], 0 }
   0x3   :  { %16 = vsyncpa [#allocation4 + $0x1], 0  ;;  %s1283_s24 = smov 0   ;;  %s1285_s25 = smov 0  }
   0x4   :  { %s1287_s26 = smov 0   ;;  %s1289_s27 = smov 0  }
   0x5 LB: > { %s1304_s28 = sadd.s32 4294967295, %s1231_s27   ;;  %s803_s29 = sadd.s32 4294967294, %s1231_s27   ;;  %s1231_s27 = sphi %s1289_s27, %s1579_s27   ;;  %s1227_s26 = sphi %s1287_s26, %s1578_s26   ;;  %s1223_s25 = sphi %s1285_s25, %s1577_s25   ;;  %s1219_s24 = sphi %s1283_s24, %s1576_s24  }
   0x6   : > { %s1308_s30 = sadd.s32 1, %s1231_s27   ;;  %s181_s8 = sadd.s32 1, %s1227_s26 }
   0x7   : > { %s178_s9 = ssub.s32 %s1231_s27, %s1308_s30  ;;  %p191_p0 = scmp.ne.s32.totalorder %s1227_s26, %s1223_s25 }
   0x8   : > { %p179_p1 = scmp.eq.s32.totalorder %s178_s9, 0  ;;  %p192_p2 = scmp.eq.s32.totalorder %s1304_s28, 1 }
   0x9   : > { %p197_p3 = scmp.ne.s32.totalorder %s1223_s25, %s1219_s24  ;;  %p198_p4 = scmp.eq.s32.totalorder %s803_s29, 1 }
   0xa   : > { %s1319_s10 = scalar_select %p179_p1, %s1227_s26, %s181_s8  }
   0xb   : > { %p1321_p5 = por %p192_p2, %p191_p0  ;;  %p1325_p6 = por %p198_p4, %p197_p3 }
   0xc   : > { %1563 = sst [smem:[#allocation11_spill]] %s1319_s10  ;;  %p804_p7 = scmp.ge.s32.totalorder %s1231_s27, 1 }
   0xd   : > { %s1564_s11 = scalar_select %p1321_p5, 1, 0 }
   0xe   : > { %s1565_s12 = scalar_select %p1325_p6, 1, 0 }
   0xf   : > { %p205_p8 = scmp.lt.s32.totalorder %s1231_s27, 3  ;;  %p1560_p9 = scmp.eq.s32.totalorder %s1304_s28, 0 }
  0x10   : > { %s1233_s14 = smov [#allocation2]   ;;  %s1234_s17 = smov [#allocation5]  }
  0x11   : > { %p1332_p10 = pnand %p804_p7, %p205_p8  ;;  %s220_s15 = sshll.u32 %s1233_s14, 4  ;;  %s221_s15 = int_to_ptr.vmem [resolvable:$true] %s220_s15 }
  0x12   : > { %s236_s18 = sshll.u32 %s1234_s17, 4  ;;  %s1105_s21 = scalar_lea.hbm %s1554_s2, 4096  ;;  %s1344_s18 = int_to_ptr.vmem [resolvable:$true] %s236_s18 }
  0x13   : > { %s1566_s13 = scalar_select %p1332_p10, 1, 0 }
  0x14   : > { %p1044_p11 = pneg %p1332_p10  ;;  %p1106_p13 = scmp.ne.s32.totalorder %s1554_s2, %s1105_s21 }
  0x15   : > { %p1112_p3 = scmp.lt.u32.totalorder %s1105_s21, %s1554_s2 }
  0x16   : > { %p1340_p12 = pnand %p1560_p9, %p1044_p11 }
  0x18   : > { %p1107_p0 = pneg %p1340_p12 }
  0x1a   : > { %p1108_p1 = pnand %p1107_p0, %p1106_p13 }
  0x1c   : > { %p1109_p2 = pneg %p1108_p1 }
  0x1e   : > { %p1114_p4 = pnand %p1112_p3, %p1109_p2 }
  0x20   : > { %1117 = shalt.err (!%p1114_p4)
}
  0x21   : > { %s1118_s9 = scalar_lea.vmem %s221_s15, 4096  ;;  %p1126_p9 = scmp.lt.s32.totalorder %s221_s15, %s221_s15 }
  0x22   : > { %p1119_p7 = scmp.ne.s32.totalorder %s221_s15, %s1118_s9  ;;  %p1127_p6 = scmp.lt.s32.totalorder %s1118_s9, %s1118_s9 }
  0x24   : > { %p1121_p8 = pnand %p1119_p7, %p1107_p0  ;;  %p1128_p5 = por %p1127_p6, %p1126_p9 }
  0x26   : > { %p1122_p11 = pneg %p1121_p8 }
  0x28   : > { %p1129_p10 = pnand %p1128_p5, %p1122_p11 }
  0x2a   : > { %1132 = shalt.err (!%p1129_p10)
}
  0x2b   : > { %s1235_s14 = smov 256   ;;  %s1236_s17 = smov 16  }
  0x2c   : > { %1047 = dma.hbm_to_vmem [thread:$0]  (!%p1340_p12), %s1554_s2, 4096, %s221_s15, [#allocation3], %s1235_s14, %s1235_s14, %s1236_s17  }
  0x2d   : > { %s1133_s23 = scalar_lea.hbm %s1556_s4, 4096 }
  0x2e   : > { %p1134_p13 = scmp.ne.s32.totalorder %s1556_s4, %s1133_s23  ;;  %p1140_p9 = scmp.lt.u32.totalorder %s1133_s23, %s1556_s4 }
  0x30   : > { %p1136_p5 = pnand %p1134_p13, %p1107_p0 }
  0x32   : > { %p1137_p6 = pneg %p1136_p5 }
  0x34   : > { %p1142_p10 = pnand %p1140_p9, %p1137_p6 }
  0x36   : > { %1145 = shalt.err (!%p1142_p10)
}
  0x37   : > { %s1146_s15 = scalar_lea.vmem %s1344_s18, 4096  ;;  %p1154_p4 = scmp.lt.s32.totalorder %s1344_s18, %s1344_s18 }
  0x38   : > { %p1147_p1 = scmp.ne.s32.totalorder %s1344_s18, %s1146_s15  ;;  %p1155_p7 = scmp.lt.s32.totalorder %s1146_s15, %s1146_s15 }
  0x3a   : > { %p1149_p2 = pnand %p1147_p1, %p1107_p0  ;;  %p1156_p8 = por %p1155_p7, %p1154_p4 }
  0x3c   : > { %p1150_p3 = pneg %p1149_p2 }
  0x3e   : > { %p1157_p11 = pnand %p1156_p8, %p1150_p3 }
  0x40   : > { %1160 = shalt.err (!%p1157_p11)
}
  0x41   : > { %s1237_s10 = smov 128   ;;  %s1238_s14 = smov 8  }
  0x42   : > { %1050 = dma.hbm_to_vmem [thread:$0]  (!%p1340_p12), %s1556_s4, 4096, %s1344_s18, [#allocation6], %s1237_s10, %s1237_s10, %s1238_s14  }
  0x43   : > { %p1568_p13 = scmp.ne.s32.totalorder %s1566_s13, 0 }
  0x44   : > { %p1569_p0 = scmp.eq.s32.totalorder (!%p1568_p13), %s1304_s28, 0 }
  0x45   : > { %265 = sbr.rel (%p1568_p13) target bundleno = 986 (0x3da), region = 48 }
  0x4c   : > { %1206 = dma.done.wait (%p1569_p0), [#allocation3], 4096   ;;  %p1570_p5 = pmov %p1569_p0 }
  0x4d   : > { %p1571_p6 = pmov %p1569_p0 }
  0x4e   : > { %1208 = vsyncadd (%p1570_p5), [#allocation3], 4294963200 }
  0x4f   : > { %1210 = dma.done.wait (%p1571_p6), [#allocation6], 4096   ;;  %p1572_p9 = pmov %p1569_p0 }
  0x50   : > { %v1239_v0 = vmov 0.0|0.0   ;;  %vm1240_vm0 = vmmov 0   ;;  %v1241_v1 = vmov 0.0   ;;  %v305_v2 = vld [vmem:[%s1553_s1] sm:$0xff]  ;;  %v306_v3 = vld [vmem:[%s1553_s1 + $0x8] sm:$0xff]  ;;  %v307_v4 = vld [vmem:[%s1553_s1 + $0x10] sm:$0xff] }
  0x51   : > { %1212 = vsyncadd (%p1572_p9), [#allocation6], 4294963200  ;;  %934 = vmatprep.subr.bf16.mxu0 %v1239_v0  ;;  %896 = vmatprep.mubr.msk.f32.mxu0 %vm1240_vm0, %v1241_v1  ;;  %v935_v5 = vpack.c.bf16 %v306_v3, %v305_v2  ;;  %v308_v6 = vld [vmem:[%s1553_s1 + $0x18] sm:$0xff]  ;;  %p300_p12 = scmp.lt.s32.totalorder %s1304_s28, 1  ;;  %v309_v7 = vld [vmem:[%s1553_s1 + $0x20] sm:$0xff]  ;;  %vm313_vm1 = vcmask 523264  }
  0x52   : > { %495 = vmatprep.mubr.f32.mxu1 %v1241_v1  ;;  %v310_v8 = vld [vmem:[%s1553_s1 + $0x28] sm:$0xff]  ;;  %v938_v9 = vpack.c.bf16 %v308_v6, %v307_v4  ;;  %v390_v11 = vld [vmem:[#allocation2 + $0x18] sm:$0xff]  ;;  %v387_v12 = vld [vmem:[#allocation2] sm:$0xff]  ;;  %s297_s15 = sand.u32 1, %s1223_s25   ;;  %s816_s19 = sshll.u32 %s1304_s28, 7 }
  0x53   : > { %936 = vmatpush3.bf16.msra.mxu0 %v935_v5  ;;  %v388_v10 = vld [vmem:[#allocation2 + $0x8] sm:$0xff]  ;;  %v389_v14 = vld [vmem:[#allocation2 + $0x10] sm:$0xff]  ;;  %v394_v16 = vld [vmem:[#allocation2 + $0x38] sm:$0xff]  ;;  %s301_s14 = scalar_select %p300_p12, %s1304_s28, 1  ;;  %v941_v23 = vpack.c.bf16 %v310_v8, %v309_v7 }
  0x54   : > { %937 = vmatprep.subr.bf16.mxu0 %v1239_v0  ;;  %v946_v13 = vpack.c.bf16 %v390_v11, %v388_v10  ;;  %v392_v15 = vld [vmem:[#allocation2 + $0x28] sm:$0xff]  ;;  %v948_v17 = vpack.c.bf16 %v389_v14, %v387_v12  ;;  %v391_v19 = vld [vmem:[#allocation2 + $0x20] sm:$0xff]  ;;  %v393_v20 = vld [vmem:[#allocation2 + $0x30] sm:$0xff]  ;;  %s811_s10 = sshll.u32 %s297_s15, 3  ;;  %s1509_s21 = scalar_lea.hbm %s1559_s7, %s816_s19 }
  0x55   : > { %v950_v18 = vpack.c.bf16 %v394_v16, %v392_v15  ;;  %v396_v21 = vld [vmem:[#allocation2 + $0x48] sm:$0xff]  ;;  %v398_v22 = vld [vmem:[#allocation2 + $0x58] sm:$0xff]  ;;  %v311_v24 = vld [vmem:[%s1553_s1 + $0x30] sm:$0xff]  ;;  %v952_v25 = vpack.c.bf16 %v393_v20, %v391_v19  ;;  %s812_s18 = sshll.u32 %s301_s14, 3  ;;  %s299_s13 = scalar_lea.vmem [#allocation7], %s811_s10 }
  0x56   : > { %947 = vmatprep.subr.bf16.mxu1 %v946_v13  ;;  %v312_v26 = vld [vmem:[%s1553_s1 + $0x38] sm:$0xff]  ;;  %v954_v27 = vpack.c.bf16 %v398_v22, %v396_v21  ;;  %v395_v28 = vld [vmem:[#allocation2 + $0x40] sm:$0xff]  ;;  %v397_v29 = vld [vmem:[#allocation2 + $0x50] sm:$0xff]  ;;  %s303_s22 = scalar_lea.vmem %s1552_s0, %s812_s18  ;;  %s722_s16 = sshll.u32 %s299_s13, 4  ;;  %s1511_s16 = int_to_ptr.vmem [resolvable:$true] %s722_s16 }
  0x57   : > { %939 = vmatpush3.bf16.msra.mxu0 %v938_v9  ;;  %949 = vmatpush1.bf16.msra.mxu1 %v948_v17  ;;  %v400_v30 = vld [vmem:[#allocation2 + $0x68] sm:$0xff]  ;;  %v402_v31 = vld [vmem:[#allocation2 + $0x78] sm:$0xff]  ;;  %v944_v32 = vpack.c.bf16 %v312_v26, %v311_v24  ;;  %v956_v33 = vpack.c.bf16 %v397_v29, %v395_v28  ;;  %v399_v35 = vld [vmem:[#allocation2 + $0x60] sm:$0xff]  ;;  %s1161_s23 = scalar_lea.vmem %s1511_s16, 128  ;;  %p1573_p1 = scmp.ne.s32.totalorder %s1564_s11, 0 }
  0x58   : > { %940 = vmatprep.subr.bf16.mxu0 %v1239_v0  ;;  %951 = vmatprep.subr.bf16.mxu1 %v950_v18  ;;  %v958_v34 = vpack.c.bf16 %v402_v31, %v400_v30  ;;  %v401_v36 = vld [vmem:[#allocation2 + $0x70] sm:$0xff]  ;;  %v404_v37 = vld [vmem:[#allocation2 + $0x88] sm:$0xff]  ;;  %v406_v38 = vld [vmem:[#allocation2 + $0x98] sm:$0xff]  ;;  %p1162_p10 = scmp.ne.s32.totalorder %s1511_s16, %s1161_s23  ;;  %s1242_s28 = smov [#allocation7]  }
  0x59   : > { %v304_v39 = vld [vmem:[%s303_s22] sm:$0xff]  ;;  %v960_v40 = vpack.c.bf16 %v401_v36, %v399_v35  ;;  %v962_v41 = vpack.c.bf16 %v406_v38, %v404_v37  ;;  %v405_v43 = vld [vmem:[#allocation2 + $0x90] sm:$0xff]  ;;  %v408_v44 = vld [vmem:[#allocation2 + $0xa8] sm:$0xff]  ;;  %s709_s22 = scalar_lea.sflag [#allocation4], %s297_s15  ;;  %s1165_s29 = sshll.u32 %s1242_s28, 4  ;;  %s1166_s29 = int_to_ptr.vmem [resolvable:$false] %s1165_s29 }
  0x5a   : > { %v403_v42 = vld [vmem:[#allocation2 + $0x80] sm:$0xff]  ;;  %v410_v45 = vld [vmem:[#allocation2 + $0xb8] sm:$0xff]  ;;  %v409_v49 = vld [vmem:[#allocation2 + $0xb0] sm:$0xff]  ;;  %p1163_p2 = pnand %p1162_p10, %p1573_p1  ;;  %s1167_s8 = scalar_lea.vmem %s1166_s29, 256 }
  0x5b   : > { %942 = vmatpush3.bf16.msra.mxu0 %v941_v23  ;;  %953 = vmatpush1.bf16.msra.mxu1 %v952_v25  ;;  %v964_v46 = vpack.c.bf16 %v405_v43, %v403_v42  ;;  %v966_v47 = vpack.c.bf16 %v410_v45, %v408_v44  ;;  %v407_v48 = vld [vmem:[#allocation2 + $0xa0] sm:$0xff]  ;;  %v412_v50 = vld [vmem:[#allocation2 + $0xc8] sm:$0xff]  ;;  %v414_v51 = vld [vmem:[#allocation2 + $0xd8] sm:$0xff]  ;;  %p1168_p4 = scmp.lt.s32.totalorder %s1511_s16, %s1166_s29  ;;  %p1169_p7 = scmp.lt.s32.totalorder %s1167_s8, %s1161_s23 }
  0x5c   : > { %943 = vmatprep.subr.bf16.mxu0 %v1239_v0  ;;  %955 = vmatprep.subr.bf16.mxu1 %v954_v27  ;;  %v968_v52 = vpack.c.bf16 %v409_v49, %v407_v48  ;;  %v970_v53 = vpack.c.bf16 %v414_v51, %v412_v50  ;;  %v411_v54 = vld [vmem:[#allocation2 + $0xc0] sm:$0xff]  ;;  %v413_v55 = vld [vmem:[#allocation2 + $0xd0] sm:$0xff]  ;;  %v416_v56 = vld [vmem:[#allocation2 + $0xe8] sm:$0xff]  ;;  %p1164_p3 = pneg %p1163_p2 }
  0x5d   : > { %v418_v57 = vld [vmem:[#allocation2 + $0xf8] sm:$0xff]  ;;  %v972_v58 = vpack.c.bf16 %v413_v55, %v411_v54  ;;  %v415_v60 = vld [vmem:[#allocation2 + $0xe0] sm:$0xff]  ;;  %v417_v61 = vld [vmem:[#allocation2 + $0xf0] sm:$0xff]  ;;  %p1170_p8 = por %p1169_p7, %p1168_p4 }
  0x5e   : > { %v974_v59 = vpack.c.bf16 %v418_v57, %v416_v56  ;;  %v976_v62 = vpack.c.bf16 %v417_v61, %v415_v60  ;;  %v528_v63 = vld [vmem:[#allocation5 + $0x80] sm:$0xff]  ;;  %v529_v2 = vld [vmem:[#allocation5 + $0x88] sm:$0xff]  ;;  %v530_v6 = vld [vmem:[#allocation5 + $0x90] sm:$0xff] }
  0x5f   : > { %945 = vmatpush3.bf16.msra.mxu0 %v944_v32  ;;  %957 = vmatpush1.bf16.msra.mxu1 %v956_v33  ;;  %v512_v3 = vld [vmem:[#allocation5] sm:$0xff]  ;;  %v978_v4 = vpack.c.bf16 %v529_v2, %v528_v63  ;;  %v513_v5 = vld [vmem:[#allocation5 + $0x8] sm:$0xff]  ;;  %v531_v7 = vld [vmem:[#allocation5 + $0x98] sm:$0xff]  ;;  %p1171_p11 = pnand %p1170_p8, %p1164_p3 }
  0x60   : > { %959 = vmatprep.subr.bf16.mxu1 %v958_v34  ;;  %v980_v8 = vpack.c.bf16 %v513_v5, %v512_v3  ;;  %v982_v9 = vpack.c.bf16 %v531_v7, %v530_v6  ;;  %v514_v10 = vld [vmem:[#allocation5 + $0x10] sm:$0xff]  ;;  %v515_v11 = vld [vmem:[#allocation5 + $0x18] sm:$0xff]  ;;  %v532_v12 = vld [vmem:[#allocation5 + $0xa0] sm:$0xff] }
  0x61   : > { %979 = vmatprep.subr.bf16.mxu0 %v978_v4  ;;  %v533_v13 = vld [vmem:[#allocation5 + $0xa8] sm:$0xff]  ;;  %v984_v14 = vpack.c.bf16 %v515_v11, %v514_v10  ;;  %v516_v16 = vld [vmem:[#allocation5 + $0x20] sm:$0xff]  ;;  %v534_v21 = vld [vmem:[#allocation5 + $0xb0] sm:$0xff] }
  0x62   : > { %897 = vmatmul.mubr.msk.f32.vlgmr.msra.gmra.mrb[0].mxu0 %vm313_vm1, %v304_v39  ;;  %v986_v15 = vpack.c.bf16 %v533_v13, %v532_v12  ;;  %v517_v17 = vld [vmem:[#allocation5 + $0x28] sm:$0xff]  ;;  %v535_v22 = vld [vmem:[#allocation5 + $0xb8] sm:$0xff]  ;;  %v518_v24 = vld [vmem:[#allocation5 + $0x30] sm:$0xff] }
  0x63   : > { %961 = vmatpush1.bf16.msra.mxu1 %v960_v40  ;;  %981 = vmatpush3.bf16.msra.mxu0 %v980_v8  ;;  %v988_v18 = vpack.c.bf16 %v517_v17, %v516_v16  ;;  %v990_v23 = vpack.c.bf16 %v535_v22, %v534_v21  ;;  %v519_v25 = vld [vmem:[#allocation5 + $0x38] sm:$0xff]  ;;  %v536_v27 = vld [vmem:[#allocation5 + $0xc0] sm:$0xff]  ;;  %v537_v28 = vld [vmem:[#allocation5 + $0xc8] sm:$0xff] }
  0x64   : > { %963 = vmatprep.subr.bf16.mxu1 %v962_v41  ;;  %983 = vmatprep.subr.bf16.mxu0 %v982_v9  ;;  %v992_v26 = vpack.c.bf16 %v519_v25, %v518_v24  ;;  %v994_v29 = vpack.c.bf16 %v537_v28, %v536_v27  ;;  %v520_v30 = vld [vmem:[#allocation5 + $0x40] sm:$0xff]  ;;  %v521_v31 = vld [vmem:[#allocation5 + $0x48] sm:$0xff]  ;;  %v538_v33 = vld [vmem:[#allocation5 + $0xd0] sm:$0xff]  ;;  %v421_v9 = vlaneseq }
  0x65   : > { %v996_v32 = vpack.c.bf16 %v521_v31, %v520_v30  ;;  %v539_v34 = vld [vmem:[#allocation5 + $0xd8] sm:$0xff]  ;;  %v540_v38 = vld [vmem:[#allocation5 + $0xe0] sm:$0xff]  ;;  %v541_v39 = vld [vmem:[#allocation5 + $0xe8] sm:$0xff] }
  0x66   : > { %v998_v35 = vpack.c.bf16 %v539_v34, %v538_v33  ;;  %v523_v36 = vld [vmem:[#allocation5 + $0x58] sm:$0xff]  ;;  %v1002_v40 = vpack.c.bf16 %v541_v39, %v540_v38  ;;  %v524_v41 = vld [vmem:[#allocation5 + $0x60] sm:$0xff]  ;;  %v525_v42 = vld [vmem:[#allocation5 + $0x68] sm:$0xff]  ;;  %v422_v10 = vshrl.u32 %v421_v9, 7 }
  0x67   : > { %965 = vmatpush1.bf16.msra.mxu1 %v964_v46  ;;  %985 = vmatpush3.bf16.msra.mxu0 %v984_v14  ;;  %v1004_v43 = vpack.c.bf16 %v525_v42, %v524_v41  ;;  %v542_v44 = vld [vmem:[#allocation5 + $0xf0] sm:$0xff]  ;;  %v543_v45 = vld [vmem:[#allocation5 + $0xf8] sm:$0xff]  ;;  %v614_v50 = vld [vmem:[%s1557_s5] sm:$0xff] }
  0x68   : > { %967 = vmatprep.subr.bf16.mxu1 %v966_v47  ;;  %987 = vmatprep.subr.bf16.mxu0 %v986_v15  ;;  %v1006_v46 = vpack.c.bf16 %v543_v45, %v542_v44  ;;  %v526_v47 = vld [vmem:[#allocation5 + $0x70] sm:$0xff]  ;;  %v527_v48 = vld [vmem:[#allocation5 + $0x78] sm:$0xff]  ;;  %v615_v51 = vld [vmem:[%s1557_s5 + $0x8] sm:$0xff]  ;;  %v423_v11 = vsub.s32 0, %v422_v10  ;;  %v427_v13 = vsub.s32 1, %v422_v10 }
  0x69   : > { %v1008_v49 = vpack.c.bf16 %v527_v48, %v526_v47  ;;  %v617_v54 = vld [vmem:[%s1557_s5 + $0x18] sm:$0xff]  ;;  %v618_v56 = vld [vmem:[%s1557_s5 + $0x20] sm:$0xff]  ;;  %v619_v57 = vld [vmem:[%s1557_s5 + $0x28] sm:$0xff] }
  0x6a   : > { %v621_v60 = vld [vmem:[%s1557_s5 + $0x38] sm:$0xff]  ;;  %v623_v63 = vld [vmem:[%s1557_s5 + $0x48] sm:$0xff]  ;;  %v624_v3 = vld [vmem:[%s1557_s5 + $0x50] sm:$0xff] }
  0x6b   : > { %969 = vmatpush1.bf16.msra.mxu1 %v968_v52  ;;  %989 = vmatpush3.bf16.msra.mxu0 %v988_v18  ;;  %v616_v52 = vld [vmem:[%s1557_s5 + $0x10] sm:$0xff]  ;;  %v625_v4 = vld [vmem:[%s1557_s5 + $0x58] sm:$0xff]  ;;  %v626_v6 = vld [vmem:[%s1557_s5 + $0x60] sm:$0xff] }
  0x6c   : > { %971 = vmatprep.subr.bf16.mxu1 %v970_v53  ;;  %991 = vmatprep.subr.bf16.mxu0 %v990_v23  ;;  %v1011_v53 = vpack.c.bf16 %v615_v51, %v614_v50  ;;  %v1014_v55 = vpack.c.bf16 %v617_v54, %v616_v52  ;;  %v1026_v5 = vpack.c.bf16 %v625_v4, %v624_v3  ;;  %v627_v7 = vld [vmem:[%s1557_s5 + $0x68] sm:$0xff]  ;;  %v419_v12 = vld [vmem:[%s1555_s3] sm:$0x3]  ;;  %v629_v30 = vld [vmem:[%s1557_s5 + $0x78] sm:$0xff] }
  0x6d   : > { %v1029_v8 = vpack.c.bf16 %v627_v7, %v626_v6  ;;  %v424_v14 = vrot.slane %v419_v12, %v423_v11  ;;  %v428_v15 = vrot.slane %v419_v12, %v427_v13 }
  0x6f   : > { %973 = vmatpush1.bf16.msra.mxu1 %v972_v58  ;;  %993 = vmatpush3.bf16.msra.mxu0 %v992_v26  ;;  %v1017_v58 = vpack.c.bf16 %v619_v57, %v618_v56 }
  0x70   : > { %975 = vmatprep.subr.bf16.mxu1 %v974_v59  ;;  %995 = vmatprep.subr.bf16.mxu0 %v994_v29  ;;  %v620_v59 = vld [vmem:[%s1557_s5 + $0x30] sm:$0xff] }
  0x71   : > { %v1020_v61 = vpack.c.bf16 %v621_v60, %v620_v59  ;;  %v628_v29 = vld [vmem:[%s1557_s5 + $0x70] sm:$0xff] }
  0x72   : > { %v1032_v31 = vpack.c.bf16 %v629_v30, %v628_v29 }
  0x73   : > { %977 = vmatpush1.bf16.msra.mxu1 %v976_v62  ;;  %997 = vmatpush3.bf16.msra.mxu0 %v996_v32  ;;  %v622_v62 = vld [vmem:[%s1557_s5 + $0x40] sm:$0xff] }
  0x74   : > { %1010 = vmatprep.subr.bf16.mxu1 %v1239_v0  ;;  %999 = vmatprep.subr.bf16.mxu0 %v998_v35  ;;  %v1023_v2 = vpack.c.bf16 %v623_v63, %v622_v62  ;;  %v814_v35 = vld [vmem:[%s1558_s6] ss:$0 sm:$0xff] }
 0x135   : > { %v383_v19 = vpop.f32.mrb[0].mxu0 }
 0x136   : > { %v898_v20 = vpop.f32.mrb[1].mxu0  ;;  %496 = vmatmul.mubr.f32.vlgmr.msra.gmra.mrb[0].mxu1 %v383_v19 }
 0x137   : > { %931 = vmatprep.mubr.msk.f32.mxu1 %vm1240_vm0, %v1241_v1  ;;  %v522_v1 = vld [vmem:[#allocation5 + $0x50] sm:$0xff]  ;;  %1012 = vmatpush3.bf16.msra.mxu1 %v1011_v53 }
 0x138   : > { %v1000_v37 = vpack.c.bf16 %v523_v36, %v522_v1  ;;  %1013 = vmatprep.subr.bf16.mxu1 %v1239_v0 }
 0x13a   : > { %1001 = vmatpush3.bf16.msra.mxu0 %v1000_v37 }
 0x13b   : > { %1003 = vmatprep.subr.bf16.mxu0 %v1002_v40  ;;  %1015 = vmatpush3.bf16.msra.mxu1 %v1014_v55 }
 0x13c   : > { %1016 = vmatprep.subr.bf16.mxu1 %v1239_v0 }
 0x13e   : > { %1005 = vmatpush3.bf16.msra.mxu0 %v1004_v43 }
 0x13f   : > { %1007 = vmatprep.subr.bf16.mxu0 %v1006_v46  ;;  %1018 = vmatpush3.bf16.msra.mxu1 %v1017_v58 }
 0x140   : > { %1019 = vmatprep.subr.bf16.mxu1 %v1239_v0 }
 0x142   : > { %1009 = vmatpush3.bf16.msra.mxu0 %v1008_v49 }
 0x143   : > { %1021 = vmatpush3.bf16.msra.mxu1 %v1020_v61 }
 0x144   : > { %1022 = vmatprep.subr.bf16.mxu1 %v1239_v0 }
 0x147   : > { %1024 = vmatpush3.bf16.msra.mxu1 %v1023_v2 }
 0x148   : > { %1025 = vmatprep.subr.bf16.mxu1 %v1239_v0 }
 0x14b   : > { %1027 = vmatpush3.bf16.msra.mxu1 %v1026_v5 }
 0x14c   : > { %1028 = vmatprep.subr.bf16.mxu1 %v1239_v0 }
 0x14f   : > { %1030 = vmatpush3.bf16.msra.mxu1 %v1029_v8 }
 0x150   : > { %1031 = vmatprep.subr.bf16.mxu1 %v1239_v0 }
 0x153   : > { %1033 = vmatpush3.bf16.msra.mxu1 %v1032_v31 }
 0x209   : > { %v497_v16 = vpop.f32.mrb[0].mxu1 }
 0x20a   : > { %v498_v17 = vadd.f32 %v497_v16, %v424_v14  ;;  %v499_v18 = vpop.f32.mrb[1].mxu1 }
 0x20b   : > { %v500_v19 = vadd.f32 %v499_v18, %v428_v15 }
 0x20c   : > { %v504_v20 = vmul.f32 0.70710677, %v498_v17  ;;  %v502_v26 = vmul.f32 0.5, %v498_v17 }
 0x20d   : > { %v505_v21 = vmul.f32 0.70710677, %v500_v19  ;;  %v503_v24 = vmul.f32 0.5, %v500_v19 }
 0x20e   : > { %1101 = verf.f32 %v504_v20 }
 0x20f   : > { %1103 = verf.f32 %v505_v21 }
 0x218   : > { %v1102_v22 = vpop.eup %1101 }
 0x219   : > { %v1104_v0 = vpop.eup %1103  ;;  %v508_v23 = vadd.f32 1.0, %v1102_v22 }
 0x21a   : > { %v509_v25 = vadd.f32 1.0, %v1104_v0 }
 0x21b   : > { %v510_v28 = vmul.f32 %v508_v23, %v502_v26 }
 0x21c   : > { %v511_v27 = vmul.f32 %v509_v25, %v503_v24 }
 0x21e   : > { %608 = vmatprep.mubr.f32.mxu0 %v511_v27 }
 0x21f   : > { %609 = vmatmul.mubr.f32.vlgmr.msra.gmra.mrb[2].mxu0 %v510_v28 }
 0x2f2   : > { %v860_v32 = vpop.f32.mrb[2].mxu0 }
 0x2f3   : > { %v861_v33 = vpop.f32.mrb[3].mxu0 }
 0x2f4   : > { %v862_v34 = vadd.f32 %v861_v33, %v860_v32 }
 0x2f6   : > { %932 = vmatmul.mubr.f32.vlgmr.msra.gmra.mrb[2].mxu1 %v862_v34 }
 0x3c9   : > { %v703_v1 = vpop.f32.mrb[2].mxu1 }
 0x3ca   : > { %v704_v36 = vadd.f32 %v814_v35, %v703_v1  ;;  %v933_v37 = vpop.f32.mrb[3].mxu1 }
 0x3cc   : > { %707 = vst.msk [vmem:[%s299_s13] sm:$0xff] %vm313_vm1, %v704_v36 }
 0x3cd   : > { %1174 = shalt.err (!%p1171_p11)
}
 0x3ce   : > { %s1175_s9 = scalar_lea.hbm %s1509_s21, 128  ;;  %s1179_s14 = scalar_lea.hbm %s1559_s7, 256 }
 0x3cf   : > { %p1176_p13 = scmp.ne.s32.totalorder %s1509_s21, %s1175_s9  ;;  %p1180_p6 = scmp.lt.u32.totalorder %s1509_s21, %s1559_s7 }
 0x3d0   : > { %p1181_p9 = scmp.lt.u32.totalorder %s1179_s14, %s1175_s9  ;;  %p1183_p10 = scmp.lt.u32.totalorder %s1175_s9, %s1509_s21 }
 0x3d1   : > { %p1177_p0 = pnand %p1176_p13, %p1573_p1 }
 0x3d2   : > { %p1182_p12 = por %p1181_p9, %p1180_p6 }
 0x3d3   : > { %p1178_p5 = pneg %p1177_p0 }
 0x3d4   : > { %p1184_p2 = por %p1183_p10, %p1182_p12 }
 0x3d6   : > { %p1185_p3 = pnand %p1184_p2, %p1178_p5 }
 0x3d8   : > { %1188 = shalt.err (!%p1185_p3)
}
 0x3d9   : > { %1042 = dma.vmem_to_hbm [thread:$0]  (%p1573_p1), %s1511_s16, 128, %s1509_s21, %s709_s22  }
 0x3da PF: > { %p1059_p4 = scmp.ge.s32.totalorder %s1231_s27, 2  ;;  %s734_s13 = sand.u32 1, %s1219_s24  }
 0x3db   : > { %p1574_p7 = scmp.ne.s32.totalorder %s1565_s12, 0  ;;  %s735_s18 = scalar_lea.sflag [#allocation4], %s734_s13 }
 0x3dd   : > { %p1052_p8 = pnand %p1059_p4, %p1574_p7 }
 0x3df   : > { %1214 = dma.done.wait (!%p1052_p8), %s735_s18, 128  }
 0x3e0   : > { %1216 = vsyncadd (!%p1052_p8), %s735_s18, 4294967168  ;;  %s1575_s20 = sld [smem:[#allocation11_spill]]  ;;  %p19_p11 = scmp.ge.s32.totalorder %s1308_s30, 4  }
 0x3e1   : > { %s1576_s24 = smov %s1223_s25  ;;  %s1577_s25 = smov %s1227_s26 }
 0x3e2   : > { %s1579_s27 = smov %s1308_s30  ;;  %21 = sbr.rel (!%p19_p11) target bundleno = 5 (0x5), region = 92 }
 0x3e6   : > { %s1578_s26 = smov %s1575_s20 }
 0x3e9   :  { %740 = vsyncpa [#allocation3], 1 }
 0x3ea   :  { %742 = vsyncpa [#allocation3 + $0x1], 1 }
 0x3eb   :  { %743 = vsyncpa [#allocation6], 1 }
 0x3ec   :  { %744 = vsyncpa [#allocation4], 1 }
 0x3ed   :  { %746 = vsyncpa [#allocation4 + $0x1], 1 }

</bundles_post_ra>
